<compile_context>
chip_gen: v5e
topology: v5e:2x2
jax: 0.10.0
libtpu: 0.0.40
codegen_flags: <defaults>
</compile_context>

<pallas_src>
import jax
import jax.numpy as jnp
from jax.experimental import pallas as pl
from jax.experimental.pallas import tpu as pltpu


def _backbone_maxpool_kernel(x_ref, wbb_ref, bbb_ref, out_ref, acc_ref):
    """One grid step = (one feature column tile) x (one block of S slices).

    x_ref   : (B, C, S_blk, H*W)  bf16   -- slices kept in PyTorch NCHW order
    wbb_ref : (C, H*W, D_tile)    bf16   -- backbone weight, one column tile
    bbb_ref : (1, D_tile)         f32
    out_ref : (B, D_tile)         f32    -- max-pooled backbone features
    acc_ref : (B, D_tile)         f32    -- running max across S blocks
    """
    s = pl.program_id(1)
    B, C, S_blk, HW = x_ref.shape
    d_tile = wbb_ref.shape[-1]

    x = x_ref[...]                                    # (B, C, S_blk, HW) bf16

    # Backbone Linear(C*H*W -> dim_feats): fold B and S_blk into the MXU M dim
    # (B*S_blk rows) and contract over (C, H*W) as C accumulated
    # (B*S_blk, HW) @ (HW, D_tile) matmuls -- no HBM-side transpose of x needed.
    # The (B, S_blk, HW) -> (B*S_blk, HW) reshape only merges sublane-major dims
    # at (8,128)-aligned boundaries, so it is layout-free.
    acc = jnp.dot(x[:, 0].reshape(B * S_blk, HW), wbb_ref[0],
                  preferred_element_type=jnp.float32)
    for c in range(1, C):                             # C small & static -> unrolled
        xc = x[:, c].reshape(B * S_blk, HW)
        acc = acc + jnp.dot(xc, wbb_ref[c], preferred_element_type=jnp.float32)
    feats = jnp.maximum(acc + bbb_ref[...], 0.0)      # ReLU, f32, (B*S_blk, D_tile)

    # AdaptiveMaxPool1d(1) over the slice axis: reduce this block's slices ...
    blk_max = jnp.max(feats.reshape(B, S_blk, d_tile), axis=1)    # (B, D_tile)

    # ... then fold into the running max across S blocks (f32 accumulator).
    @pl.when(s == 0)
    def _():
        acc_ref[...] = blk_max

    @pl.when(s > 0)
    def _():
        acc_ref[...] = jnp.maximum(acc_ref[...], blk_max)

    @pl.when(s == pl.num_programs(1) - 1)
    def _():
        out_ref[...] = acc_ref[...]


def net2dpool_forward(x, w_bb, b_bb, w_fc, b_fc, *, s_block=None, d_tile=128):
    """Forward of Net2DPool(pool='max', conv_before_pool=0, wso=None).

    x: (B, C, S, H, W) float (pass bf16 to avoid an in-wrapper cast pass).
    Returns (B, num_classes) float32.
    """
    B, C, S, H, W = x.shape
    HW = H * W
    F = C * HW
    dim_feats = w_bb.shape[1]
    assert w_bb.shape[0] == F

    if s_block is None:
        s_block = S                      # small seqs: whole problem in one grid step
    assert S % s_block == 0 and (s_block == S or s_block % 8 == 0)

    # Lane-dense padding of the feature dim (dim_feats -> multiple of 128).
    d_pad = pl.cdiv(dim_feats, d_tile) * d_tile

    # --- one-time weight prep (tiny) -------------------------------------------
    w_bb_p = jnp.zeros((F, d_pad), jnp.bfloat16)
    w_bb_p = w_bb_p.at[:, :dim_feats].set(w_bb.astype(jnp.bfloat16))
    w_bb_p = w_bb_p.reshape(C, HW, d_pad)             # contract over (C, HW)
    b_bb_p = jnp.zeros((1, d_pad), jnp.float32)
    b_bb_p = b_bb_p.at[:, :dim_feats].set(b_bb.reshape(1, -1).astype(jnp.float32))

    # --- input prep: free reshape only (no transpose / no extra HBM pass) ------
    x4 = x.reshape(B, C, S, HW)
    if x4.dtype != jnp.bfloat16:
        x4 = x4.astype(jnp.bfloat16)

    pooled = pl.pallas_call(
        _backbone_maxpool_kernel,
        out_shape=jax.ShapeDtypeStruct((B, d_pad), jnp.float32),
        grid_spec=pltpu.PrefetchScalarGridSpec(
            num_scalar_prefetch=0,
            grid=(d_pad // d_tile, S // s_block),      # (parallel, reduction)
            in_specs=[
                pl.BlockSpec((B, C, s_block, HW), lambda d, s: (0, 0, s, 0)),
                # NOTE: w_bb tile is invariant along s; on very large problems its
                # VMEM footprint can be halved with pipeline_mode=pl.Buffered(1)
                # and bounded further by K-tiling over HW + vmem_limit_bytes.
                pl.BlockSpec((C, HW, d_tile), lambda d, s: (0, 0, d)),
                pl.BlockSpec((1, d_tile), lambda d, s: (0, d)),
            ],
            out_specs=pl.BlockSpec((B, d_tile), lambda d, s: (0, d)),
            scratch_shapes=[pltpu.VMEM((B, d_tile), jnp.float32)],
        ),
        compiler_params=pltpu.CompilerParams(
            # Feature-tile axis may be sharded across TensorCores (v7x); the S
            # axis carries the running max so it must stay "arbitrary" and last.
            dimension_semantics=("parallel", "arbitrary"),
        ),
    )(x4, w_bb_p, b_bb_p)

    # Dropout is identity at inference; fc is a tiny (B, dim_feats) x
    # (dim_feats, num_classes) matmul -- cheaper in the wrapper than keeping a
    # lane-masked (B, num_classes) output slab + extra weight resident in VMEM.
    feats = pooled[:, :dim_feats]
    return feats @ w_fc.astype(jnp.float32) + b_fc.astype(jnp.float32)


def reference_forward(x, w_bb, b_bb, w_fc, b_fc):
    B, C, S, H, W = x.shape
    xs = jnp.transpose(x, (2, 0, 1, 3, 4)).reshape(S, B, -1).astype(jnp.float32)
    feats = jnp.maximum(
        jnp.einsum("sbf,fd->sbd", xs, w_bb.astype(jnp.float32),
                   precision=jax.lax.Precision.HIGHEST) + b_bb, 0.0)
    pooled = jnp.max(feats, axis=0)                   # AdaptiveMaxPool1d(1) over seq
    return pooled @ w_fc + b_fc


if __name__ == "__main__":
    # small shapes consistent with the forward: B=2, C=4, S=8, H=W=16
    B, C, S, H, W = 2, 4, 8, 16, 16
    dim_feats, num_classes = 32, 2

    key = jax.random.PRNGKey(0)
    k_x, k_wbb, k_bbb, k_wfc, k_bfc = jax.random.split(key, 5)

    x = jax.random.normal(k_x, (B, C, S, H, W), dtype=jnp.float32)
    w_bb = jax.random.normal(k_wbb, (C * H * W, dim_feats), dtype=jnp.float32) * 0.02
    b_bb = jax.random.normal(k_bbb, (1, dim_feats), dtype=jnp.float32) * 0.02
    w_fc = jax.random.normal(k_wfc, (dim_feats, num_classes), dtype=jnp.float32) * 0.1
    b_fc = jax.random.normal(k_bfc, (1, num_classes), dtype=jnp.float32) * 0.1

    # Pre-round x / w_bb to bf16 so the kernel (bf16 MXU operands, f32 accumulation)
    # and the f32 reference see identical operand values.
    x_bf = x.astype(jnp.bfloat16)
    w_bb_bf = w_bb.astype(jnp.bfloat16)

    out = net2dpool_forward(x_bf, w_bb_bf, b_bb, w_fc, b_fc)
    jax.block_until_ready(out)

    ref = reference_forward(x_bf.astype(jnp.float32), w_bb_bf.astype(jnp.float32),
                            b_bb, w_fc, b_fc)
    assert out.shape == (B, num_classes)
    assert jnp.allclose(out, ref, atol=1e-3, rtol=1e-3), float(jnp.max(jnp.abs(out - ref)))

    print("KERNEL_OK")
</pallas_src>

<mosaic_0001>
module attributes {stable_mosaic.version = 11 : i64} {
  func.func @_backbone_maxpool_kernel(%arg0: i32, %arg1: i32, %arg2: memref<2x4x8x256xbf16, #tpu.memory_space<vmem>>, %arg3: memref<4x256x128xbf16, #tpu.memory_space<vmem>>, %arg4: memref<1x128xf32, #tpu.memory_space<vmem>>, %arg5: memref<2x128xf32, #tpu.memory_space<vmem>>, %arg6: memref<2x128xf32, #tpu.memory_space<vmem>>) attributes {dimension_semantics = [#tpu.dimension_semantics<parallel>, #tpu.dimension_semantics<arbitrary>], iteration_bounds = array<i64: 1, 1>, scalar_prefetch = 0 : i64, scratch_operands = 1 : i64, tpu.core_type = #tpu.core_type<tc>, window_params = [{transform_indices = @transform_0, window_bounds = array<i64: 2, 4, 8, 256>}, {transform_indices = @transform_1, window_bounds = array<i64: 4, 256, 128>}, {transform_indices = @transform_2, window_bounds = array<i64: 1, 128>}, {transform_indices = @transform_3, window_bounds = array<i64: 2, 128>}]} {
    %c0 = arith.constant 0 : index
    %c0_0 = arith.constant 0 : index
    %c0_1 = arith.constant 0 : index
    %c0_2 = arith.constant 0 : index
    %0 = vector.load %arg2[%c0, %c0_0, %c0_1, %c0_2] : memref<2x4x8x256xbf16, #tpu.memory_space<vmem>>, vector<2x4x8x256xbf16>
    %1 = vector.extract_strided_slice %0 {offsets = [0, 0, 0, 0], sizes = [2, 1, 8, 256], strides = [1, 1, 1, 1]} : vector<2x4x8x256xbf16> to vector<2x1x8x256xbf16>
    %2 = vector.shape_cast %1 : vector<2x1x8x256xbf16> to vector<2x8x256xbf16>
    %3 = vector.shape_cast %2 : vector<2x8x256xbf16> to vector<16x256xbf16>
    %c0_3 = arith.constant 0 : index
    %c0_4 = arith.constant 0 : index
    %c0_5 = arith.constant 0 : index
    %4 = vector.load %arg3[%c0_3, %c0_4, %c0_5] : memref<4x256x128xbf16, #tpu.memory_space<vmem>>, vector<1x256x128xbf16>
    %5 = vector.shape_cast %4 : vector<1x256x128xbf16> to vector<256x128xbf16>
    %cst = arith.constant dense<0.000000e+00> : vector<16x128xf32>
    %6 = tpu.matmul %3, %5, %cst {dimension_numbers = #tpu.dot_dimension_numbers<[1], [0], [0], [1], [0, 0, 1, 1], [], []>} : vector<16x256xbf16>, vector<256x128xbf16>, vector<16x128xf32> -> vector<16x128xf32>
    %7 = vector.extract_strided_slice %0 {offsets = [0, 1, 0, 0], sizes = [2, 1, 8, 256], strides = [1, 1, 1, 1]} : vector<2x4x8x256xbf16> to vector<2x1x8x256xbf16>
    %8 = vector.shape_cast %7 : vector<2x1x8x256xbf16> to vector<2x8x256xbf16>
    %9 = vector.shape_cast %8 : vector<2x8x256xbf16> to vector<16x256xbf16>
    %c1 = arith.constant 1 : index
    %c0_6 = arith.constant 0 : index
    %c0_7 = arith.constant 0 : index
    %10 = vector.load %arg3[%c1, %c0_6, %c0_7] : memref<4x256x128xbf16, #tpu.memory_space<vmem>>, vector<1x256x128xbf16>
    %11 = vector.shape_cast %10 : vector<1x256x128xbf16> to vector<256x128xbf16>
    %cst_8 = arith.constant dense<0.000000e+00> : vector<16x128xf32>
    %12 = tpu.matmul %9, %11, %cst_8 {dimension_numbers = #tpu.dot_dimension_numbers<[1], [0], [0], [1], [0, 0, 1, 1], [], []>} : vector<16x256xbf16>, vector<256x128xbf16>, vector<16x128xf32> -> vector<16x128xf32>
    %13 = arith.addf %6, %12 : vector<16x128xf32>
    %14 = vector.extract_strided_slice %0 {offsets = [0, 2, 0, 0], sizes = [2, 1, 8, 256], strides = [1, 1, 1, 1]} : vector<2x4x8x256xbf16> to vector<2x1x8x256xbf16>
    %15 = vector.shape_cast %14 : vector<2x1x8x256xbf16> to vector<2x8x256xbf16>
    %16 = vector.shape_cast %15 : vector<2x8x256xbf16> to vector<16x256xbf16>
    %c2 = arith.constant 2 : index
    %c0_9 = arith.constant 0 : index
    %c0_10 = arith.constant 0 : index
    %17 = vector.load %arg3[%c2, %c0_9, %c0_10] : memref<4x256x128xbf16, #tpu.memory_space<vmem>>, vector<1x256x128xbf16>
    %18 = vector.shape_cast %17 : vector<1x256x128xbf16> to vector<256x128xbf16>
    %cst_11 = arith.constant dense<0.000000e+00> : vector<16x128xf32>
    %19 = tpu.matmul %16, %18, %cst_11 {dimension_numbers = #tpu.dot_dimension_numbers<[1], [0], [0], [1], [0, 0, 1, 1], [], []>} : vector<16x256xbf16>, vector<256x128xbf16>, vector<16x128xf32> -> vector<16x128xf32>
    %20 = arith.addf %13, %19 : vector<16x128xf32>
    %21 = vector.extract_strided_slice %0 {offsets = [0, 3, 0, 0], sizes = [2, 1, 8, 256], strides = [1, 1, 1, 1]} : vector<2x4x8x256xbf16> to vector<2x1x8x256xbf16>
    %22 = vector.shape_cast %21 : vector<2x1x8x256xbf16> to vector<2x8x256xbf16>
    %23 = vector.shape_cast %22 : vector<2x8x256xbf16> to vector<16x256xbf16>
    %c3 = arith.constant 3 : index
    %c0_12 = arith.constant 0 : index
    %c0_13 = arith.constant 0 : index
    %24 = vector.load %arg3[%c3, %c0_12, %c0_13] : memref<4x256x128xbf16, #tpu.memory_space<vmem>>, vector<1x256x128xbf16>
    %25 = vector.shape_cast %24 : vector<1x256x128xbf16> to vector<256x128xbf16>
    %cst_14 = arith.constant dense<0.000000e+00> : vector<16x128xf32>
    %26 = tpu.matmul %23, %25, %cst_14 {dimension_numbers = #tpu.dot_dimension_numbers<[1], [0], [0], [1], [0, 0, 1, 1], [], []>} : vector<16x256xbf16>, vector<256x128xbf16>, vector<16x128xf32> -> vector<16x128xf32>
    %27 = arith.addf %20, %26 : vector<16x128xf32>
    %c0_15 = arith.constant 0 : index
    %c0_16 = arith.constant 0 : index
    %28 = vector.load %arg4[%c0_15, %c0_16] : memref<1x128xf32, #tpu.memory_space<vmem>>, vector<1x128xf32>
    %29 = vector.broadcast %28 : vector<1x128xf32> to vector<16x128xf32>
    %30 = arith.addf %27, %29 : vector<16x128xf32>
    %cst_17 = arith.constant 0.000000e+00 : f32
    %31 = vector.broadcast %cst_17 : f32 to vector<16x128xf32>
    %32 = arith.maximumf %30, %31 : vector<16x128xf32>
    %33 = vector.shape_cast %32 : vector<16x128xf32> to vector<2x8x128xf32>
    %cst_18 = arith.constant dense<0xFF800000> : vector<2x128xf32>
    %34 = vector.multi_reduction <maximumf>, %33, %cst_18 [1] : vector<2x8x128xf32> to vector<2x128xf32>
    %c0_i32 = arith.constant 0 : i32
    %35 = arith.cmpi eq, %arg1, %c0_i32 : i32
    %36 = arith.extui %35 : i1 to i32
    %c0_i32_19 = arith.constant 0 : i32
    %37 = arith.cmpi ne, %36, %c0_i32_19 : i32
    scf.if %37 {
      %c0_24 = arith.constant 0 : index
      %c0_25 = arith.constant 0 : index
      %44 = vector.load %arg6[%c0_24, %c0_25] : memref<2x128xf32, #tpu.memory_space<vmem>>, vector<2x128xf32>
      tpu.vector_store %arg6[%c0_24, %c0_25], %34 {strides = array<i32>} : memref<2x128xf32, #tpu.memory_space<vmem>>, vector<2x128xf32>,
    } else {
    }
    %c0_i32_20 = arith.constant 0 : i32
    %38 = arith.cmpi sgt, %arg1, %c0_i32_20 : i32
    %39 = arith.extui %38 : i1 to i32
    %c0_i32_21 = arith.constant 0 : i32
    %40 = arith.cmpi ne, %39, %c0_i32_21 : i32
    scf.if %40 {
      %c0_24 = arith.constant 0 : index
      %c0_25 = arith.constant 0 : index
      %44 = vector.load %arg6[%c0_24, %c0_25] : memref<2x128xf32, #tpu.memory_space<vmem>>, vector<2x128xf32>
      %45 = arith.maximumf %44, %34 : vector<2x128xf32>
      %c0_26 = arith.constant 0 : index
      %c0_27 = arith.constant 0 : index
      %46 = vector.load %arg6[%c0_26, %c0_27] : memref<2x128xf32, #tpu.memory_space<vmem>>, vector<2x128xf32>
      tpu.vector_store %arg6[%c0_26, %c0_27], %45 {strides = array<i32>} : memref<2x128xf32, #tpu.memory_space<vmem>>, vector<2x128xf32>,
    } else {
    }
    %c0_i32_22 = arith.constant 0 : i32
    %41 = arith.cmpi eq, %arg1, %c0_i32_22 : i32
    %42 = arith.extui %41 : i1 to i32
    %c0_i32_23 = arith.constant 0 : i32
    %43 = arith.cmpi ne, %42, %c0_i32_23 : i32
    scf.if %43 {
      %c0_24 = arith.constant 0 : index
      %c0_25 = arith.constant 0 : index
      %44 = vector.load %arg6[%c0_24, %c0_25] : memref<2x128xf32, #tpu.memory_space<vmem>>, vector<2x128xf32>
      %c0_26 = arith.constant 0 : index
      %c0_27 = arith.constant 0 : index
      %45 = vector.load %arg5[%c0_26, %c0_27] : memref<2x128xf32, #tpu.memory_space<vmem>>, vector<2x128xf32>
      tpu.vector_store %arg5[%c0_26, %c0_27], %44 {strides = array<i32>} : memref<2x128xf32, #tpu.memory_space<vmem>>, vector<2x128xf32>,
    } else {
    }
    return
  }
  func.func @transform_0(%arg0: i32, %arg1: i32) -> (i32, i32, i32, i32) {
    %c0_i32 = arith.constant 0 : i32
    %c0_i32_0 = arith.constant 0 : i32
    %c0_i32_1 = arith.constant 0 : i32
    %c0_i32_2 = arith.constant 0 : i32
    return %c0_i32, %c0_i32_0, %arg1, %c0_i32_1 : i32, i32, i32, i32
  }
  func.func @transform_1(%arg0: i32, %arg1: i32) -> (i32, i32, i32) {
    %c0_i32 = arith.constant 0 : i32
    %c0_i32_0 = arith.constant 0 : i32
    %c0_i32_1 = arith.constant 0 : i32
    return %c0_i32, %c0_i32_0, %arg0 : i32, i32, i32
  }
  func.func @transform_2(%arg0: i32, %arg1: i32) -> (i32, i32) {
    %c0_i32 = arith.constant 0 : i32
    %c0_i32_0 = arith.constant 0 : i32
    return %c0_i32, %arg0 : i32, i32
  }
  func.func @transform_3(%arg0: i32, %arg1: i32) -> (i32, i32) {
    %c0_i32 = arith.constant 0 : i32
    %c0_i32_0 = arith.constant 0 : i32
    return %c0_i32, %arg0 : i32, i32
  }
}

</mosaic_0001>

<bundles_post_ra>
// kernel: tpu_custom_call.1
= control target key start
LH: loop header
LB: loop body
LE: loop exit
PB: predicated region body
PF: predicated region fallthrough
CT: control target
= control target key end

     0   :  { %8 = vsyncpa [#allocation4], 0  ;;  %s1276_s0 = inlined_call_operand.hbm [shape: bf16[2,4,8,256], index: 0, kind: input, shape index: {}]   ;;  %s1277_s1 = inlined_call_operand.hbm [shape: bf16[4,256,128], index: 1, kind: input, shape index: {}]   ;;  %s1278_s2 = inlined_call_operand.vmem [shape: f32[1,128], index: 2, kind: input, shape index: {}]   ;;  %s1279_s3 = inlined_call_operand.hbm [shape: f32[2,128], index: 3, kind: output, shape index: {}]  }
   0x1   :  { %9 = vsyncpa [#allocation7], 0 }
   0x2   :  { %10 = vsyncpa [#allocation5], 0  ;;  %s15_s14 = sshll.u32 %s1276_s0, 4  ;;  %s1237_s15 = smov [#allocation3]   ;;  %s16_s14 = int_to_ptr.hbm [resolvable:$true] %s15_s14 }
   0x3   :  { %s17_s16 = sshll.u32 %s1237_s15, 4  ;;  %s28_s19 = sshll.u32 %s1277_s1, 4  ;;  %s18_s16 = int_to_ptr.vmem [resolvable:$true] %s17_s16  ;;  %s29_s19 = int_to_ptr.hbm [resolvable:$true] %s28_s19 }
   0x4   :  { %s1238_s20 = smov 128   ;;  %s1239_s21 = smov 8  }
   0x5   :  { %23 = dma.hbm_to_vmem [thread:$0]  %s16_s14, 1024, %s18_s16, [#allocation4], %s1238_s20, %s1238_s20, %s1239_s21  }
   0x6   :  { %s1240_s22 = smov [#allocation6]   ;;  %s1241_s24 = smov 64  }
   0x7   :  { %s30_s23 = sshll.u32 %s1240_s22, 4  ;;  %s1242_s25 = smov 4   ;;  %s31_s23 = int_to_ptr.vmem [resolvable:$true] %s30_s23 }
   0x8   :  { %36 = dma.hbm_to_vmem [thread:$0]  %s29_s19, 8192, %s31_s23, [#allocation7], %s1241_s24, %s1241_s24, %s1242_s25  }
   0x9   :  { %1231 = dma.done.wait [#allocation4], 1024  }
   0xa   :  { %1232 = vsyncadd [#allocation4], 4294966272 }
   0xb   :  { %1233 = dma.done.wait [#allocation7], 8192  }
   0xc   :  { %1234 = vsyncadd [#allocation7], 4294959104  ;;  %v1110_v0 = vld [vmem:[#allocation6 + $0xb8] sm:$0xff]  ;;  %v1109_v4 = vld [vmem:[#allocation6 + $0xb0] sm:$0xff]  ;;  %vm752_vm0 = vcmask 1041409   ;;  %s780_s29 = sshll.u32 %s1279_s3, 4  ;;  %s781_s29 = int_to_ptr.hbm [resolvable:$true] %s780_s29 }
   0xd   :  { %v1118_v1 = vld [vmem:[#allocation6 + $0xf8] sm:$0xff]  ;;  %226 = vmatpush.bf16.msra.mxu0 %v1110_v0  ;;  %v1117_v5 = vld [vmem:[#allocation6 + $0xf0] sm:$0xff]  ;;  %v1108_v8 = vld [vmem:[#allocation6 + $0xa8] sm:$0xff] }
   0xe   :  { %v1094_v2 = vld [vmem:[#allocation6 + $0x38] sm:$0xff]  ;;  %240 = vmatpush.bf16.msra.mxu1 %v1118_v1  ;;  %v1093_v6 = vld [vmem:[#allocation6 + $0x30] sm:$0xff]  ;;  %v1116_v9 = vld [vmem:[#allocation6 + $0xe8] sm:$0xff] }
   0xf   :  { %v1102_v3 = vld [vmem:[#allocation6 + $0x78] sm:$0xff]  ;;  %360 = vmatpush.bf16.msra.mxu2 %v1094_v2  ;;  %v1101_v7 = vld [vmem:[#allocation6 + $0x70] sm:$0xff]  ;;  %v1092_v10 = vld [vmem:[#allocation6 + $0x28] sm:$0xff] }
  0x10   :  { %374 = vmatpush.bf16.msra.mxu3 %v1102_v3  ;;  %v1100_v11 = vld [vmem:[#allocation6 + $0x68] sm:$0xff]  ;;  %v1107_v12 = vld [vmem:[#allocation6 + $0xa0] sm:$0xff]  ;;  %v1106_v16 = vld [vmem:[#allocation6 + $0x98] sm:$0xff] }
  0x11   :  { %227 = vmatpush.bf16.msra.mxu0 %v1109_v4  ;;  %v1115_v13 = vld [vmem:[#allocation6 + $0xe0] sm:$0xff]  ;;  %v1114_v17 = vld [vmem:[#allocation6 + $0xd8] sm:$0xff]  ;;  %v1105_v20 = vld [vmem:[#allocation6 + $0x90] sm:$0xff] }
  0x12   :  { %241 = vmatpush.bf16.msra.mxu1 %v1117_v5  ;;  %v1091_v14 = vld [vmem:[#allocation6 + $0x20] sm:$0xff]  ;;  %v1090_v18 = vld [vmem:[#allocation6 + $0x18] sm:$0xff]  ;;  %v1113_v21 = vld [vmem:[#allocation6 + $0xd0] sm:$0xff] }
  0x13   :  { %361 = vmatpush.bf16.msra.mxu2 %v1093_v6  ;;  %v1099_v15 = vld [vmem:[#allocation6 + $0x60] sm:$0xff]  ;;  %v1098_v19 = vld [vmem:[#allocation6 + $0x58] sm:$0xff]  ;;  %v1089_v22 = vld [vmem:[#allocation6 + $0x10] sm:$0xff] }
  0x14   :  { %375 = vmatpush.bf16.msra.mxu3 %v1101_v7  ;;  %v1097_v23 = vld [vmem:[#allocation6 + $0x50] sm:$0xff]  ;;  %v1104_v24 = vld [vmem:[#allocation6 + $0x88] sm:$0xff]  ;;  %v1103_v28 = vld [vmem:[#allocation6 + $0x80] sm:$0xff] }
  0x15   :  { %228 = vmatpush.bf16.msra.mxu0 %v1108_v8  ;;  %v1112_v25 = vld [vmem:[#allocation6 + $0xc8] sm:$0xff]  ;;  %v1111_v29 = vld [vmem:[#allocation6 + $0xc0] sm:$0xff]  ;;  %v1126_v32 = vld [vmem:[#allocation6 + $0x138] sm:$0xff] }
  0x16   :  { %242 = vmatpush.bf16.msra.mxu1 %v1116_v9  ;;  %v1088_v26 = vld [vmem:[#allocation6 + $0x8] sm:$0xff]  ;;  %v1087_v30 = vld [vmem:[#allocation6] sm:$0xff]  ;;  %v1134_v33 = vld [vmem:[#allocation6 + $0x178] sm:$0xff] }
  0x17   :  { %362 = vmatpush.bf16.msra.mxu2 %v1092_v10  ;;  %v1096_v27 = vld [vmem:[#allocation6 + $0x48] sm:$0xff]  ;;  %v1095_v31 = vld [vmem:[#allocation6 + $0x40] sm:$0xff]  ;;  %v1142_v42 = vld [vmem:[#allocation6 + $0x1b8] sm:$0xff] }
  0x18   :  { %376 = vmatpush.bf16.msra.mxu3 %v1100_v11  ;;  %v865_v34 = vld [vmem:[#allocation3] sm:$0xf]  ;;  %v1079_v36 = vld [vmem:[#allocation3 + $0x4] sm:$0xf]  ;;  %v793_v38 = vld [vmem:[#allocation3 + $0x8] sm:$0xf] }
  0x19   :  { %229 = vmatpush.bf16.msra.mxu0 %v1107_v12  ;;  %v1083_v35 = vld [vmem:[#allocation3 + $0x1c] sm:$0xf0]  ;;  %v867_v37 = vld [vmem:[#allocation3 + $0x20] sm:$0xf0]  ;;  %v1084_v39 = vld [vmem:[#allocation3 + $0x24] sm:$0xf0] }
  0x1a   :  { %243 = vmatpush.bf16.msra.mxu1 %v1115_v13  ;;  %v1080_v40 = vld [vmem:[#allocation3 + $0xc] sm:$0xf]  ;;  %v1150_v43 = vld [vmem:[#allocation6 + $0x1f8] sm:$0xff]  ;;  %v866_v44 = vor.u32 %v1083_v35, %v865_v34  ;;  %v870_v45 = vor.u32 %v1079_v36, %v867_v37  ;;  %v794_v46 = vor.u32 %v1084_v39, %v793_v38  ;;  %v1125_v48 = vld [vmem:[#allocation6 + $0x130] sm:$0xff] }
  0x1b   :  { %363 = vmatpush.bf16.msra.mxu2 %v1091_v14  ;;  %v795_v41 = vld [vmem:[#allocation3 + $0x28] sm:$0xf0]  ;;  %v1133_v49 = vld [vmem:[#allocation6 + $0x170] sm:$0xff]  ;;  %v1123_v56 = vld [vmem:[#allocation6 + $0x120] sm:$0xff] }
  0x1c   :  { %377 = vmatpush.bf16.msra.mxu3 %v1099_v15  ;;  %v798_v47 = vor.u32 %v1080_v40, %v795_v41  ;;  %v1141_v50 = vld [vmem:[#allocation6 + $0x1b0] sm:$0xff]  ;;  %v1124_v52 = vld [vmem:[#allocation6 + $0x128] sm:$0xff]  ;;  %v1131_v57 = vld [vmem:[#allocation6 + $0x160] sm:$0xff] }
  0x1d   :  { %230 = vmatpush.bf16.msra.mxu0 %v1106_v16  ;;  %v1149_v51 = vld [vmem:[#allocation6 + $0x1f0] sm:$0xff]  ;;  %v1132_v53 = vld [vmem:[#allocation6 + $0x168] sm:$0xff]  ;;  %v1139_v58 = vld [vmem:[#allocation6 + $0x1a0] sm:$0xff] }
  0x1e   :  { %244 = vmatpush.bf16.msra.mxu1 %v1114_v17  ;;  %v1140_v54 = vld [vmem:[#allocation6 + $0x1a8] sm:$0xff]  ;;  %v1147_v59 = vld [vmem:[#allocation6 + $0x1e0] sm:$0xff]  ;;  %v1122_v60 = vld [vmem:[#allocation6 + $0x118] sm:$0xff] }
  0x1f   :  { %364 = vmatpush.bf16.msra.mxu2 %v1090_v18  ;;  %v1148_v55 = vld [vmem:[#allocation6 + $0x1e8] sm:$0xff]  ;;  %v1130_v61 = vld [vmem:[#allocation6 + $0x158] sm:$0xff]  ;;  %v1121_v0 = vld [vmem:[#allocation6 + $0x110] sm:$0xff] }
  0x20   :  { %378 = vmatpush.bf16.msra.mxu3 %v1098_v19  ;;  %v1138_v62 = vld [vmem:[#allocation6 + $0x198] sm:$0xff]  ;;  %v1129_v1 = vld [vmem:[#allocation6 + $0x150] sm:$0xff]  ;;  %v1120_v4 = vld [vmem:[#allocation6 + $0x108] sm:$0xff] }
  0x21   :  { %231 = vmatpush.bf16.msra.mxu0 %v1105_v20  ;;  %v1146_v63 = vld [vmem:[#allocation6 + $0x1d8] sm:$0xff]  ;;  %v1137_v2 = vld [vmem:[#allocation6 + $0x190] sm:$0xff]  ;;  %v1128_v5 = vld [vmem:[#allocation6 + $0x148] sm:$0xff] }
  0x22   :  { %245 = vmatpush.bf16.msra.mxu1 %v1113_v21  ;;  %v1145_v3 = vld [vmem:[#allocation6 + $0x1d0] sm:$0xff]  ;;  %v1136_v6 = vld [vmem:[#allocation6 + $0x188] sm:$0xff]  ;;  %v1119_v8 = vld [vmem:[#allocation6 + $0x100] sm:$0xff] }
  0x23   :  { %365 = vmatpush.bf16.msra.mxu2 %v1089_v22  ;;  %v1144_v7 = vld [vmem:[#allocation6 + $0x1c8] sm:$0xff]  ;;  %v1127_v9 = vld [vmem:[#allocation6 + $0x140] sm:$0xff]  ;;  %v937_v12 = vld [vmem:[#allocation3 + $0x10] sm:$0xf] }
  0x24   :  { %379 = vmatpush.bf16.msra.mxu3 %v1097_v23  ;;  %v1135_v10 = vld [vmem:[#allocation6 + $0x180] sm:$0xff]  ;;  %v1085_v13 = vld [vmem:[#allocation3 + $0x2c] sm:$0xf0]  ;;  %v1081_v14 = vld [vmem:[#allocation3 + $0x14] sm:$0xf] }
  0x25   :  { %232 = vmatpush.bf16.msra.mxu0 %v1104_v24  ;;  %v1143_v11 = vld [vmem:[#allocation6 + $0x1c0] sm:$0xff]  ;;  %v939_v15 = vld [vmem:[#allocation3 + $0x30] sm:$0xf0]  ;;  %v1009_v16 = vld [vmem:[#allocation3 + $0x18] sm:$0xf]  ;;  %v938_v20 = vor.u32 %v1085_v13, %v937_v12 }
  0x26   :  { %246 = vmatpush.bf16.msra.mxu1 %v1112_v25  ;;  %v1086_v17 = vld [vmem:[#allocation3 + $0x34] sm:$0xf0]  ;;  %v1082_v18 = vld [vmem:[#allocation3 + $0x1c] sm:$0xf]  ;;  %v942_v21 = vor.u32 %v1081_v14, %v939_v15 }
  0x27   :  { %366 = vmatpush.bf16.msra.mxu2 %v1088_v26  ;;  %v1011_v19 = vld [vmem:[#allocation3 + $0x38] sm:$0xf0]  ;;  %v1010_v22 = vor.u32 %v1086_v17, %v1009_v16 }
  0x28   :  { %380 = vmatpush.bf16.msra.mxu3 %v1096_v27  ;;  %v1014_v23 = vor.u32 %v1082_v18, %v1011_v19 }
  0x29   :  { %233 = vmatpush.bf16.msra.mxu0 %v1103_v28 }
  0x2a   :  { %247 = vmatpush.bf16.msra.mxu1 %v1111_v29 }
  0x2b   :  { %367 = vmatpush.bf16.msra.mxu2 %v1087_v30 }
  0x2c   :  { %381 = vmatpush.bf16.msra.mxu3 %v1095_v31  ;;  %234 = vmatmul.bf16.vlgmr.msra.gmra.mxu0 %v794_v46 }
  0x2d   :  { %527 = vmatpush.bf16.msrb.mxu0 %v1126_v32  ;;  %248 = vmatmul.bf16.vlgmr.msra.gmra.mxu1 %v798_v47 }
  0x2e   :  { %541 = vmatpush.bf16.msrb.mxu1 %v1134_v33  ;;  %368 = vmatmul.bf16.vlgmr.msra.gmra.mxu2 %v866_v44 }
  0x2f   :  { %696 = vmatpush.bf16.msrb.mxu2 %v1142_v42  ;;  %382 = vmatmul.bf16.vlgmr.msra.gmra.mxu3 %v870_v45 }
  0x30   :  { %710 = vmatpush.bf16.msrb.mxu3 %v1150_v43  ;;  %v1158_v43 = vld [vmem:[%s1278_s2] ss:$0 sm:$0xff]  ;;  %s1243_s2 = smov [#allocation8]  }
  0x31   :  { %528 = vmatpush.bf16.msrb.mxu0 %v1125_v48  ;;  %s778_s26 = sshll.u32 %s1243_s2, 4  ;;  %s779_s26 = int_to_ptr.vmem [resolvable:$true] %s778_s26 }
  0x32   :  { %542 = vmatpush.bf16.msrb.mxu1 %v1133_v49 }
  0x33   :  { %697 = vmatpush.bf16.msrb.mxu2 %v1141_v50 }
  0x34   :  { %711 = vmatpush.bf16.msrb.mxu3 %v1149_v51 }
  0x35   :  { %529 = vmatpush.bf16.msrb.mxu0 %v1124_v52 }
  0x36   :  { %543 = vmatpush.bf16.msrb.mxu1 %v1132_v53 }
  0x37   :  { %698 = vmatpush.bf16.msrb.mxu2 %v1140_v54 }
  0x38   :  { %712 = vmatpush.bf16.msrb.mxu3 %v1148_v55 }
  0x39   :  { %530 = vmatpush.bf16.msrb.mxu0 %v1123_v56 }
  0x3a   :  { %544 = vmatpush.bf16.msrb.mxu1 %v1131_v57 }
  0x3b   :  { %699 = vmatpush.bf16.msrb.mxu2 %v1139_v58 }
  0x3c   :  { %713 = vmatpush.bf16.msrb.mxu3 %v1147_v59 }
  0x3d   :  { %531 = vmatpush.bf16.msrb.mxu0 %v1122_v60 }
  0x3e   :  { %545 = vmatpush.bf16.msrb.mxu1 %v1130_v61 }
  0x3f   :  { %700 = vmatpush.bf16.msrb.mxu2 %v1138_v62 }
  0x40   :  { %714 = vmatpush.bf16.msrb.mxu3 %v1146_v63 }
  0x41   :  { %532 = vmatpush.bf16.msrb.mxu0 %v1121_v0 }
  0x42   :  { %546 = vmatpush.bf16.msrb.mxu1 %v1129_v1 }
  0x43   :  { %701 = vmatpush.bf16.msrb.mxu2 %v1137_v2 }
  0x44   :  { %715 = vmatpush.bf16.msrb.mxu3 %v1145_v3 }
  0x45   :  { %533 = vmatpush.bf16.msrb.mxu0 %v1120_v4 }
  0x46   :  { %547 = vmatpush.bf16.msrb.mxu1 %v1128_v5 }
  0x47   :  { %702 = vmatpush.bf16.msrb.mxu2 %v1136_v6 }
  0x48   :  { %716 = vmatpush.bf16.msrb.mxu3 %v1144_v7 }
  0x49   :  { %534 = vmatpush.bf16.msrb.mxu0 %v1119_v8 }
  0x4a   :  { %548 = vmatpush.bf16.msrb.mxu1 %v1127_v9 }
  0x4b   :  { %703 = vmatpush.bf16.msrb.mxu2 %v1135_v10 }
  0x4c   :  { %717 = vmatpush.bf16.msrb.mxu3 %v1143_v11  ;;  %535 = vmatmul.bf16.vlgmr.msrb.gmra.mxu0 %v938_v20 }
  0x4d   :  { %549 = vmatmul.bf16.vlgmr.msrb.gmra.mxu1 %v942_v21 }
  0x4e   :  { %704 = vmatmul.bf16.vlgmr.msrb.gmra.mxu2 %v1010_v22 }
  0x4f   :  { %718 = vmatmul.bf16.vlgmr.msrb.gmra.mxu3 %v1014_v23 }
  0xa9   :  { %v235_v24 = vpop.f32.mrf.mxu0 }
  0xaa   :  { %v249_v25 = vpop.f32.mrf.mxu1 }
  0xab   :  { %v250_v30 = vadd.f32 %v249_v25, %v235_v24 }
  0xb1   :  { %v369_v26 = vpop.f32.mrf.mxu2  ;;  %v237_v28 = vpop.f32.mrf.mxu0 }
  0xb2   :  { %v383_v27 = vpop.f32.mrf.mxu3  ;;  %v251_v29 = vpop.f32.mrf.mxu1  ;;  %v370_v35 = vadd.f32 %v369_v26, %v250_v30 }
  0xb3   :  { %v252_v38 = vadd.f32 %v251_v29, %v237_v28 }
  0xb4   :  { %v384_v37 = vadd.f32 %v383_v27, %v370_v35 }
  0xb9   :  { %v371_v31 = vpop.f32.mrf.mxu2 }
  0xba   :  { %v385_v32 = vpop.f32.mrf.mxu3  ;;  %v372_v46 = vadd.f32 %v371_v31, %v252_v38 }
  0xbc   :  { %v386_v50 = vadd.f32 %v385_v32, %v372_v46 }
  0xc9   :  { %v536_v33 = vpop.f32.mrf.mxu0 }
  0xca   :  { %v550_v34 = vpop.f32.mrf.mxu1 }
  0xcb   :  { %v551_v36 = vadd.f32 %v550_v34, %v536_v33 }
  0xcd   :  { %v555_v41 = vadd.f32 %v551_v36, %v384_v37 }
  0xd1   :  { %v705_v39 = vpop.f32.mrf.mxu2  ;;  %v538_v44 = vpop.f32.mrf.mxu0 }
  0xd2   :  { %v719_v40 = vpop.f32.mrf.mxu3  ;;  %v552_v45 = vpop.f32.mrf.mxu1 }
  0xd3   :  { %v720_v42 = vadd.f32 %v719_v40, %v705_v39  ;;  %v553_v49 = vadd.f32 %v552_v45, %v538_v44 }
  0xd5   :  { %v724_v47 = vadd.f32 %v720_v42, %v555_v41  ;;  %v556_v55 = vadd.f32 %v553_v49, %v386_v50 }
  0xd7   :  { %v730_v48 = vadd.f32 %v1158_v43, %v724_v47 }
  0xd9   :  { %v732_v51 = vmax.f32 %v730_v48, 0.0  ;;  %v707_v52 = vpop.f32.mrf.mxu2 }
  0xda   :  { %v721_v53 = vpop.f32.mrf.mxu3 }
  0xdb   :  { %v734_v54 = vrot.slane %v732_v51, 4  ;;  %v722_v56 = vadd.f32 %v721_v53, %v707_v52 }
  0xdd   :  { %v735_v57 = vmax.f32 %v732_v51, %v734_v54  ;;  %v725_v58 = vadd.f32 %v722_v56, %v556_v55 }
  0xdf   :  { %v731_v59 = vadd.f32 %v1158_v43, %v725_v58  ;;  %v736_v60 = vrot.slane %v735_v57, 2 }
  0xe1   :  { %v733_v61 = vmax.f32 %v731_v59, 0.0  ;;  %v737_v63 = vmax.f32 %v735_v57, %v736_v60 }
  0xe3   :  { %v740_v62 = vrot.slane %v733_v61, 4  ;;  %v738_v2 = vrot.slane %v737_v63, 1 }
  0xe5   :  { %v741_v0 = vmax.f32 %v733_v61, %v740_v62  ;;  %v739_v5 = vmax.f32 %v737_v63, %v738_v2 }
  0xe7   :  { %v742_v1 = vrot.slane %v741_v0, 2 }
  0xe9   :  { %v743_v3 = vmax.f32 %v741_v0, %v742_v1 }
  0xeb   :  { %v744_v4 = vrot.slane %v743_v3, 1 }
  0xed   :  { %v745_v6 = vmax.f32 %v743_v3, %v744_v4 }
  0xef   :  { %v753_v7 = vsel %vm752_vm0, %v745_v6, %v739_v5 }
  0xf0   :  { %755 = vst [vmem:[#allocation2] sm:$0x3] %v753_v7 }
  0xf7   :  { %v771_v8 = vld [vmem:[#allocation2] sm:$0x3] }
  0xf8   :  { %772 = vst [vmem:[#allocation8] sm:$0x3] %v771_v8 }
  0xf9   :  { %783 = dma.vmem_to_hbm [thread:$0]  %s779_s26, 32, %s781_s29, [#allocation5]  }
  0xfa   :  { %1235 = dma.done.wait [#allocation5], 32  }
  0xfb   :  { %1236 = vsyncadd [#allocation5], 4294967264 }
  0xfc   :  { %788 = vsyncpa [#allocation4], 1 }
  0xfd   :  { %789 = vsyncpa [#allocation7], 1 }
  0xfe   :  { %790 = vsyncpa [#allocation5], 1 }

</bundles_post_ra>
